<compile_context>
chip_gen: v7x
topology: tpu7x:2x2x1
jax: 0.10.0
libtpu: 0.0.40
codegen_flags: <defaults>
</compile_context>

<pallas_src>
import functools

import jax
import jax.numpy as jnp
from jax.experimental import pallas as pl
from jax.experimental.pallas import tpu as pltpu


HALO_PAD = 128   # per-side slab halo (multiple of 128, must be >= true radius = 2*n_res)


# ----------------------------------------------------------------------------- kernel
def _generator_kernel(x_ref, w_in_ref, b_in_ref, w_res_ref, b_res_ref,
                      w_out_ref, b_out_ref, o_ref, h_ref, taps_ref,
                      *, NT, TT, W, R, C, n_blocks):
    """Fused Generator forward for one (batch, time-tile) grid cell.

    x_ref    : (C_in, W)            bf16  raw-input slab (W = TT + 2*HALO_PAD, or T if NT==1)
    w_in_ref : (C, C_in)            bf16  1x1 conv_in weight
    b_in_ref : (C, 1)               f32
    w_res_ref: (2*n_blocks, C, 5*C) bf16  stacked tap-major conv5 weights
    b_res_ref: (2*n_blocks, C, 1)   f32
    w_out_ref: (C_in, C)            bf16  1x1 conv_out weight
    b_out_ref: (C_in, 1)            f32
    o_ref    : (C_in, TT)           f32   output tile
    h_ref    : (C, W)               f32   VMEM scratch: resident activation
    taps_ref : (5*C, W)             bf16  VMEM scratch: im2col operand, reused by all convs
    """

    def leaky(v):
        return jnp.maximum(v, 0.01 * v)

    def conv5(h, idx):
        # h: (C, W) f32.  Reflection-pad by 2 using the slab's own edge lanes; the five
        # shifted taps are stored directly into the persistent (5C, W) scratch and the
        # conv is ONE (C, 5C) @ (5C, W) bf16 MXU matmul with f32 accumulation.
        hb = h.astype(jnp.bfloat16)
        taps_ref[2 * C:3 * C, :] = hb                                        # center tap
        taps_ref[0 * C:1 * C, :] = jnp.concatenate(
            [hb[:, 2:3], hb[:, 1:2], hb[:, :W - 2]], axis=1)                 # shift +2
        taps_ref[1 * C:2 * C, :] = jnp.concatenate(
            [hb[:, 1:2], hb[:, :W - 1]], axis=1)                             # shift +1
        taps_ref[3 * C:4 * C, :] = jnp.concatenate(
            [hb[:, 1:], hb[:, W - 2:W - 1]], axis=1)                         # shift -1
        taps_ref[4 * C:5 * C, :] = jnp.concatenate(
            [hb[:, 2:], hb[:, W - 2:W - 1], hb[:, W - 3:W - 2]], axis=1)     # shift -2
        out = jnp.dot(w_res_ref[idx], taps_ref[...],
                      preferred_element_type=jnp.float32)
        return out + b_res_ref[idx]

    # Conv1d(in_channels, channels, 1) + LeakyReLU(0.01)
    h_ref[...] = leaky(
        jnp.dot(w_in_ref[...], x_ref[...], preferred_element_type=jnp.float32)
        + b_in_ref[...])

    # 7 residual layers: pl.loop bounds live ranges; weights indexed dynamically.
    @pl.loop(0, n_blocks)
    def _(blk):
        y = leaky(conv5(h_ref[...], 2 * blk))
        h_ref[...] = h_ref[...] + conv5(y, 2 * blk + 1)

    # Conv1d(channels, in_channels, 1) + Tanh
    out = jnp.tanh(
        jnp.dot(w_out_ref[...], h_ref[...].astype(jnp.bfloat16),
                preferred_element_type=jnp.float32) + b_out_ref[...])        # (C_in, W)

    if NT == 1:
        o_ref[...] = out.astype(o_ref.dtype)
    else:
        # Extract this tile's output columns from the halo'd slab.  Offsets are static
        # 128-multiples: 0 (first tile), HALO_PAD (middle), W-R (last; R = valid cols).
        i = pl.program_id(1)

        @pl.when(i == 0)
        def _():
            o_ref[...] = out[:, 0:TT].astype(o_ref.dtype)

        @pl.when(jnp.logical_and(i > 0, i < NT - 1))
        def _():
            o_ref[...] = out[:, HALO_PAD:HALO_PAD + TT].astype(o_ref.dtype)

        @pl.when(i == NT - 1)
        def _():
            tail = out[:, W - R:W]
            if R < TT:   # padded output columns beyond T are discarded by the wrapper
                tail = jnp.concatenate(
                    [tail, jnp.zeros((tail.shape[0], TT - R), tail.dtype)], axis=1)
            o_ref[...] = tail.astype(o_ref.dtype)


# ----------------------------------------------------------------------------- wrapper
def _choose_time_tile(T, max_time_tile):
    """Largest multiple-of-256 tile <= max_time_tile and <= T - 2*HALO_PAD (so NT>=2)."""
    if T % 128 == 0 and T >= 2 * HALO_PAD + 256:
        tt_cap = min(max_time_tile, T - 2 * HALO_PAD)
        TT = (tt_cap // 256) * 256
        NT = -(-T // TT)                      # ceil
        return TT, NT
    return T, 1                               # small / unaligned T: single fused tile


def generator_forward(x, params, max_time_tile=4096):
    """x: (B, in_channels, T) float32 -> (B, in_channels, T) float32."""
    B, c_in, T = x.shape
    assert T >= 3, "ReflectionPad1d(2) requires T >= 3"
    channels = params["w_in"].shape[0]
    n_res = params["w_res"].shape[0]          # 2 * n_blocks conv5 layers
    n_blocks = n_res // 2
    true_halo = 2 * n_res                     # receptive-field radius of the conv stack
    assert true_halo <= HALO_PAD, (
        "HALO_PAD must cover the conv stack's receptive radius "
        f"(need >= {true_halo}, have {HALO_PAD})")

    TT, NT = _choose_time_tile(T, max(256, int(max_time_tile)))
    if NT == 1:
        W, R = T, T
    else:
        W = TT + 2 * HALO_PAD                 # multiple of 256, W <= T by construction
        R = T - (NT - 1) * TT                 # valid columns in the last tile (>= 128)
    T_out = NT * TT

    # Overlapping bf16 input slabs: slab i covers clamp(i*TT - HALO_PAD, 0, T - W) .. +W.
    # (Only `in_channels` rows, so the duplication is tiny versus the `channels`-wide
    #  activations that never touch HBM.)
    xb = x.astype(jnp.bfloat16)
    if NT == 1:
        x_slabs = xb[:, None, :, :]                                   # (B, 1, C_in, T)
    else:
        starts = [min(max(i * TT - HALO_PAD, 0), T - W) for i in range(NT)]
        x_slabs = jnp.stack([xb[:, :, s:s + W] for s in starts], axis=1)
    # TODO(synk): the slab gather could be removed entirely with a scalar-prefetched
    # per-tile start offset + BoundedSlice index_map (minor win at small in_channels).

    kernel = functools.partial(_generator_kernel, NT=NT, TT=TT, W=W, R=R,
                               C=channels, n_blocks=n_blocks)

    out = pl.pallas_call(
        kernel,
        out_shape=jax.ShapeDtypeStruct((B, c_in, T_out), jnp.float32),
        grid_spec=pltpu.PrefetchScalarGridSpec(
            num_scalar_prefetch=0,
            grid=(B, NT),
            in_specs=[
                pl.BlockSpec((None, None, c_in, W), lambda b, i: (b, i, 0, 0)),
                pl.BlockSpec((channels, c_in), lambda b, i: (0, 0)),
                pl.BlockSpec((channels, 1), lambda b, i: (0, 0)),
                pl.BlockSpec((n_res, channels, 5 * channels),
                             lambda b, i: (0, 0, 0)),
                pl.BlockSpec((n_res, channels, 1), lambda b, i: (0, 0, 0)),
                pl.BlockSpec((c_in, channels), lambda b, i: (0, 0)),
                pl.BlockSpec((c_in, 1), lambda b, i: (0, 0)),
            ],
            out_specs=pl.BlockSpec((None, c_in, TT), lambda b, i: (b, 0, i)),
            scratch_shapes=[
                pltpu.VMEM((channels, W), jnp.float32),        # resident activation h
                pltpu.VMEM((5 * channels, W), jnp.bfloat16),   # im2col taps operand
            ]),
        compiler_params=pltpu.CompilerParams(
            dimension_semantics=("parallel", "parallel"),
            vmem_limit_bytes=48 * 1024 * 1024),
    )(x_slabs, params["w_in"], params["b_in"], params["w_res"],
      params["b_res"], params["w_out"], params["b_out"])

    return out if T_out == T else out[:, :, :T]


# ----------------------------------------------------------------------------- params
def _weight_norm(v, g):
    """PyTorch weight_norm (dim=0): w[o] = g[o] * v[o] / ||v[o]||_F."""
    norm = jnp.sqrt(jnp.sum(v * v, axis=(1, 2), keepdims=True))
    return g * v / norm


def _make_conv(key, c_out, c_in, k):
    kv, kg, kb = jax.random.split(key, 3)
    v = jax.random.normal(kv, (c_out, c_in, k), jnp.float32) * 0.1
    g = jax.random.uniform(kg, (c_out, 1, 1), jnp.float32, 0.5, 1.5)
    b = jax.random.normal(kb, (c_out,), jnp.float32) * 0.01
    w = _weight_norm(v, g)                                        # (c_out, c_in, k)
    # Tap-major stacking: w_stacked[o, kk*c_in + ii] = w[o, ii, kk]
    w_stacked = jnp.transpose(w, (0, 2, 1)).reshape(c_out, k * c_in)
    return w_stacked, b.reshape(c_out, 1)


def init_generator_params(key, in_channels, channels, n_blocks=7):
    keys = jax.random.split(key, 2 + 2 * n_blocks)
    w_in, b_in = _make_conv(keys[0], channels, in_channels, 1)
    w_out, b_out = _make_conv(keys[1], in_channels, channels, 1)
    w_res, b_res = [], []
    for l in range(2 * n_blocks):
        w, b = _make_conv(keys[2 + l], channels, channels, 5)
        w_res.append(w)
        b_res.append(b)
    return {
        "w_in": w_in.astype(jnp.bfloat16), "b_in": b_in,
        "w_out": w_out.astype(jnp.bfloat16), "b_out": b_out,
        "w_res": jnp.stack(w_res).astype(jnp.bfloat16),   # (2*n_blocks, C, 5*C)
        "b_res": jnp.stack(b_res),                        # (2*n_blocks, C, 1)
    }


# ----------------------------------------------------------------------------- reference
def _ref_forward(x, params):
    """Pure-JAX reference with the identical numerics policy (bf16 matmul in, f32 acc)."""
    T = x.shape[-1]

    def dot_ct(w, a):  # w: (o, c) bf16, a: (B, c, T) bf16 -> (B, o, T) f32
        return jnp.einsum("oc,bct->bot", w, a,
                          preferred_element_type=jnp.float32)

    def leaky(v):
        return jnp.where(v >= 0, v, 0.01 * v)

    def conv5(h, w, b):
        hp = jnp.pad(h, ((0, 0), (0, 0), (2, 2)), mode="reflect").astype(jnp.bfloat16)
        taps = jnp.concatenate([hp[:, :, k:k + T] for k in range(5)], axis=1)
        return dot_ct(w, taps) + b[None]

    h = leaky(dot_ct(params["w_in"], x.astype(jnp.bfloat16)) + params["b_in"][None])
    n_blocks = params["w_res"].shape[0] // 2
    for blk in range(n_blocks):
        y = leaky(conv5(h, params["w_res"][2 * blk], params["b_res"][2 * blk]))
        h = h + conv5(y, params["w_res"][2 * blk + 1], params["b_res"][2 * blk + 1])
    out = dot_ct(params["w_out"], h.astype(jnp.bfloat16)) + params["b_out"][None]
    return jnp.tanh(out)


# ----------------------------------------------------------------------------- main
if __name__ == "__main__":
    B, in_channels, channels = 2, 4, 32

    key = jax.random.PRNGKey(0)
    k_par, k_x1, k_x2, k_x3 = jax.random.split(key, 4)
    params = init_generator_params(k_par, in_channels, channels)

    fwd = jax.jit(generator_forward)
    ref_fwd = jax.jit(_ref_forward)

    def check(x):
        out = jax.block_until_ready(fwd(x, params))
        assert out.shape == x.shape, out.shape
        ref = ref_fwd(x, params)
        err = float(jnp.max(jnp.abs(out - ref)))
        assert jnp.allclose(out, ref, atol=2e-3, rtol=2e-3), err

    # Case 1: short, non-128-aligned T -> single fused tile (NT=1), exact in-kernel
    # reflection at both boundaries.
    check(jax.random.normal(k_x1, (B, in_channels, 80), jnp.float32))

    # Case 2: T=512 -> TT=256, NT=2; lane/MXU-aligned slab W=512, divisible last tile.
    check(jax.random.normal(k_x2, (B, in_channels, 512), jnp.float32))

    # Case 3: B=1, T=640 -> TT=256, NT=3; exercises the middle-tile offset and the
    # remainder last tile, and keeps >=2 parallel grid cells for v7x even at batch 1.
    check(jax.random.normal(k_x3, (1, in_channels, 640), jnp.float32))

    print("KERNEL_OK")
</pallas_src>

<mosaic_0001>
module attributes {stable_mosaic.version = 11 : i64} {
  func.func @_generator_kernel(%arg0: i32, %arg1: i32, %arg2: memref<1x1x4x80xbf16, #tpu.memory_space<vmem>>, %arg3: memref<32x4xbf16, #tpu.memory_space<vmem>>, %arg4: memref<32x1xf32, #tpu.memory_space<vmem>>, %arg5: memref<14x32x160xbf16, #tpu.memory_space<vmem>>, %arg6: memref<14x32x1xf32, #tpu.memory_space<vmem>>, %arg7: memref<4x32xbf16, #tpu.memory_space<vmem>>, %arg8: memref<4x1xf32, #tpu.memory_space<vmem>>, %arg9: memref<1x4x80xf32, #tpu.memory_space<vmem>>, %arg10: memref<32x80xf32, #tpu.memory_space<vmem>>, %arg11: memref<160x80xbf16, #tpu.memory_space<vmem>>) attributes {dimension_semantics = [#tpu.dimension_semantics<parallel>, #tpu.dimension_semantics<parallel>], iteration_bounds = array<i64: 2, 1>, scalar_prefetch = 0 : i64, scratch_operands = 2 : i64, tpu.core_type = #tpu.core_type<tc>, window_params = [{transform_indices = @transform_0, window_bounds = array<i64: 1, 1, 4, 80>}, {pipeline_mode = #tpu.pipeline_mode<synchronous>, transform_indices = @transform_1, window_bounds = array<i64: 32, 4>}, {pipeline_mode = #tpu.pipeline_mode<synchronous>, transform_indices = @transform_2, window_bounds = array<i64: 32, 1>}, {pipeline_mode = #tpu.pipeline_mode<synchronous>, transform_indices = @transform_3, window_bounds = array<i64: 14, 32, 160>}, {pipeline_mode = #tpu.pipeline_mode<synchronous>, transform_indices = @transform_4, window_bounds = array<i64: 14, 32, 1>}, {pipeline_mode = #tpu.pipeline_mode<synchronous>, transform_indices = @transform_5, window_bounds = array<i64: 4, 32>}, {pipeline_mode = #tpu.pipeline_mode<synchronous>, transform_indices = @transform_6, window_bounds = array<i64: 4, 1>}, {transform_indices = @transform_7, window_bounds = array<i64: 1, 4, 80>}]} {
    %c0 = arith.constant 0 : index
    %c0_0 = arith.constant 0 : index
    %0 = vector.load %arg3[%c0, %c0_0] : memref<32x4xbf16, #tpu.memory_space<vmem>>, vector<32x4xbf16>
    %c0_1 = arith.constant 0 : index
    %c0_2 = arith.constant 0 : index
    %c0_3 = arith.constant 0 : index
    %c0_4 = arith.constant 0 : index
    %1 = vector.load %arg2[%c0_1, %c0_2, %c0_3, %c0_4] : memref<1x1x4x80xbf16, #tpu.memory_space<vmem>>, vector<1x1x4x80xbf16>
    %2 = vector.shape_cast %1 : vector<1x1x4x80xbf16> to vector<4x80xbf16>
    %cst = arith.constant dense<0.000000e+00> : vector<32x80xf32>
    %3 = tpu.matmul %0, %2, %cst {dimension_numbers = #tpu.dot_dimension_numbers<[1], [0], [0], [1], [0, 0, 1, 1], [], []>} : vector<32x4xbf16>, vector<4x80xbf16>, vector<32x80xf32> -> vector<32x80xf32>
    %c0_5 = arith.constant 0 : index
    %c0_6 = arith.constant 0 : index
    %4 = vector.load %arg4[%c0_5, %c0_6] : memref<32x1xf32, #tpu.memory_space<vmem>>, vector<32x1xf32>
    %5 = vector.broadcast %4 : vector<32x1xf32> to vector<32x80xf32>
    %6 = arith.addf %3, %5 : vector<32x80xf32>
    %cst_7 = arith.constant 0.00999999977 : f32
    %7 = vector.broadcast %cst_7 : f32 to vector<32x80xf32>
    %8 = arith.mulf %7, %6 : vector<32x80xf32>
    %9 = arith.maximumf %6, %8 : vector<32x80xf32>
    %c0_8 = arith.constant 0 : index
    %c0_9 = arith.constant 0 : index
    %10 = vector.load %arg10[%c0_8, %c0_9] : memref<32x80xf32, #tpu.memory_space<vmem>>, vector<32x80xf32>
    tpu.vector_store %arg10[%c0_8, %c0_9], %9 {strides = array<i32>} : memref<32x80xf32, #tpu.memory_space<vmem>>, vector<32x80xf32>,
    %c0_i32 = arith.constant 0 : i32
    %c7_i32 = arith.constant 7 : i32
    %11 = arith.addi %c0_i32, %c7_i32 : i32
    %c1_i32 = arith.constant 1 : i32
    scf.for %arg12 = %c0_i32 to %11 step %c1_i32  : i32 {
      %c1_i32_21 = arith.constant 1 : i32
      %23 = arith.muli %arg12, %c1_i32_21 : i32
      %c0_i32_22 = arith.constant 0 : i32
      %24 = arith.addi %c0_i32_22, %23 : i32
      %c0_23 = arith.constant 0 : index
      %c0_24 = arith.constant 0 : index
      %25 = vector.load %arg10[%c0_23, %c0_24] : memref<32x80xf32, #tpu.memory_space<vmem>>, vector<32x80xf32>
      %c2_i32 = arith.constant 2 : i32
      %26 = arith.muli %c2_i32, %24 : i32
      %27 = arith.truncf %25 : vector<32x80xf32> to vector<32x80xbf16>
      %c64 = arith.constant 64 : index
      %c0_25 = arith.constant 0 : index
      %28 = vector.load %arg11[%c64, %c0_25] : memref<160x80xbf16, #tpu.memory_space<vmem>>, vector<32x80xbf16>
      tpu.vector_store %arg11[%c64, %c0_25], %27 {strides = array<i32>} : memref<160x80xbf16, #tpu.memory_space<vmem>>, vector<32x80xbf16>,
      %29 = vector.extract_strided_slice %27 {offsets = [0, 2], sizes = [32, 1], strides = [1, 1]} : vector<32x80xbf16> to vector<32x1xbf16>
      %30 = vector.extract_strided_slice %27 {offsets = [0, 1], sizes = [32, 1], strides = [1, 1]} : vector<32x80xbf16> to vector<32x1xbf16>
      %31 = vector.extract_strided_slice %27 {offsets = [0, 0], sizes = [32, 78], strides = [1, 1]} : vector<32x80xbf16> to vector<32x78xbf16>
      %32 = tpu.concatenate %29, %30, %31 in 1 : vector<32x1xbf16>, vector<32x1xbf16>, vector<32x78xbf16> -> vector<32x80xbf16>
      %c0_26 = arith.constant 0 : index
      %c0_27 = arith.constant 0 : index
      %33 = vector.load %arg11[%c0_26, %c0_27] : memref<160x80xbf16, #tpu.memory_space<vmem>>, vector<32x80xbf16>
      tpu.vector_store %arg11[%c0_26, %c0_27], %32 {strides = array<i32>} : memref<160x80xbf16, #tpu.memory_space<vmem>>, vector<32x80xbf16>,
      %34 = vector.extract_strided_slice %27 {offsets = [0, 1], sizes = [32, 1], strides = [1, 1]} : vector<32x80xbf16> to vector<32x1xbf16>
      %35 = vector.extract_strided_slice %27 {offsets = [0, 0], sizes = [32, 79], strides = [1, 1]} : vector<32x80xbf16> to vector<32x79xbf16>
      %36 = tpu.concatenate %34, %35 in 1 : vector<32x1xbf16>, vector<32x79xbf16> -> vector<32x80xbf16>
      %c32 = arith.constant 32 : index
      %c0_28 = arith.constant 0 : index
      %37 = vector.load %arg11[%c32, %c0_28] : memref<160x80xbf16, #tpu.memory_space<vmem>>, vector<32x80xbf16>
      tpu.vector_store %arg11[%c32, %c0_28], %36 {strides = array<i32>} : memref<160x80xbf16, #tpu.memory_space<vmem>>, vector<32x80xbf16>,
      %38 = vector.extract_strided_slice %27 {offsets = [0, 1], sizes = [32, 79], strides = [1, 1]} : vector<32x80xbf16> to vector<32x79xbf16>
      %39 = vector.extract_strided_slice %27 {offsets = [0, 78], sizes = [32, 1], strides = [1, 1]} : vector<32x80xbf16> to vector<32x1xbf16>
      %40 = tpu.concatenate %38, %39 in 1 : vector<32x79xbf16>, vector<32x1xbf16> -> vector<32x80xbf16>
      %c96 = arith.constant 96 : index
      %c0_29 = arith.constant 0 : index
      %41 = vector.load %arg11[%c96, %c0_29] : memref<160x80xbf16, #tpu.memory_space<vmem>>, vector<32x80xbf16>
      tpu.vector_store %arg11[%c96, %c0_29], %40 {strides = array<i32>} : memref<160x80xbf16, #tpu.memory_space<vmem>>, vector<32x80xbf16>,
      %42 = vector.extract_strided_slice %27 {offsets = [0, 2], sizes = [32, 78], strides = [1, 1]} : vector<32x80xbf16> to vector<32x78xbf16>
      %43 = vector.extract_strided_slice %27 {offsets = [0, 78], sizes = [32, 1], strides = [1, 1]} : vector<32x80xbf16> to vector<32x1xbf16>
      %44 = vector.extract_strided_slice %27 {offsets = [0, 77], sizes = [32, 1], strides = [1, 1]} : vector<32x80xbf16> to vector<32x1xbf16>
      %45 = tpu.concatenate %42, %43, %44 in 1 : vector<32x78xbf16>, vector<32x1xbf16>, vector<32x1xbf16> -> vector<32x80xbf16>
      %c128 = arith.constant 128 : index
      %c0_30 = arith.constant 0 : index
      %46 = vector.load %arg11[%c128, %c0_30] : memref<160x80xbf16, #tpu.memory_space<vmem>>, vector<32x80xbf16>
      tpu.vector_store %arg11[%c128, %c0_30], %45 {strides = array<i32>} : memref<160x80xbf16, #tpu.memory_space<vmem>>, vector<32x80xbf16>,
      %47 = arith.index_cast %26 : i32 to index
      %c0_31 = arith.constant 0 : index
      %c0_32 = arith.constant 0 : index
      %48 = vector.load %arg5[%47, %c0_31, %c0_32] : memref<14x32x160xbf16, #tpu.memory_space<vmem>>, vector<1x32x160xbf16>
      %49 = vector.shape_cast %48 : vector<1x32x160xbf16> to vector<32x160xbf16>
      %c0_33 = arith.constant 0 : index
      %c0_34 = arith.constant 0 : index
      %50 = vector.load %arg11[%c0_33, %c0_34] : memref<160x80xbf16, #tpu.memory_space<vmem>>, vector<160x80xbf16>
      %cst_35 = arith.constant dense<0.000000e+00> : vector<32x80xf32>
      %51 = tpu.matmul %49, %50, %cst_35 {dimension_numbers = #tpu.dot_dimension_numbers<[1], [0], [0], [1], [0, 0, 1, 1], [], []>} : vector<32x160xbf16>, vector<160x80xbf16>, vector<32x80xf32> -> vector<32x80xf32>
      %52 = arith.index_cast %26 : i32 to index
      %c0_36 = arith.constant 0 : index
      %c0_37 = arith.constant 0 : index
      %53 = vector.load %arg6[%52, %c0_36, %c0_37] : memref<14x32x1xf32, #tpu.memory_space<vmem>>, vector<1x32x1xf32>
      %54 = vector.shape_cast %53 : vector<1x32x1xf32> to vector<32x1xf32>
      %55 = vector.broadcast %54 : vector<32x1xf32> to vector<32x80xf32>
      %56 = arith.addf %51, %55 : vector<32x80xf32>
      %cst_38 = arith.constant 0.00999999977 : f32
      %57 = vector.broadcast %cst_38 : f32 to vector<32x80xf32>
      %58 = arith.mulf %57, %56 : vector<32x80xf32>
      %59 = arith.maximumf %56, %58 : vector<32x80xf32>
      %c0_39 = arith.constant 0 : index
      %c0_40 = arith.constant 0 : index
      %60 = vector.load %arg10[%c0_39, %c0_40] : memref<32x80xf32, #tpu.memory_space<vmem>>, vector<32x80xf32>
      %c2_i32_41 = arith.constant 2 : i32
      %61 = arith.muli %c2_i32_41, %24 : i32
      %c1_i32_42 = arith.constant 1 : i32
      %62 = arith.addi %61, %c1_i32_42 : i32
      %63 = arith.truncf %59 : vector<32x80xf32> to vector<32x80xbf16>
      %c64_43 = arith.constant 64 : index
      %c0_44 = arith.constant 0 : index
      %64 = vector.load %arg11[%c64_43, %c0_44] : memref<160x80xbf16, #tpu.memory_space<vmem>>, vector<32x80xbf16>
      tpu.vector_store %arg11[%c64_43, %c0_44], %63 {strides = array<i32>} : memref<160x80xbf16, #tpu.memory_space<vmem>>, vector<32x80xbf16>,
      %65 = vector.extract_strided_slice %63 {offsets = [0, 2], sizes = [32, 1], strides = [1, 1]} : vector<32x80xbf16> to vector<32x1xbf16>
      %66 = vector.extract_strided_slice %63 {offsets = [0, 1], sizes = [32, 1], strides = [1, 1]} : vector<32x80xbf16> to vector<32x1xbf16>
      %67 = vector.extract_strided_slice %63 {offsets = [0, 0], sizes = [32, 78], strides = [1, 1]} : vector<32x80xbf16> to vector<32x78xbf16>
      %68 = tpu.concatenate %65, %66, %67 in 1 : vector<32x1xbf16>, vector<32x1xbf16>, vector<32x78xbf16> -> vector<32x80xbf16>
      %c0_45 = arith.constant 0 : index
      %c0_46 = arith.constant 0 : index
      %69 = vector.load %arg11[%c0_45, %c0_46] : memref<160x80xbf16, #tpu.memory_space<vmem>>, vector<32x80xbf16>
      tpu.vector_store %arg11[%c0_45, %c0_46], %68 {strides = array<i32>} : memref<160x80xbf16, #tpu.memory_space<vmem>>, vector<32x80xbf16>,
      %70 = vector.extract_strided_slice %63 {offsets = [0, 1], sizes = [32, 1], strides = [1, 1]} : vector<32x80xbf16> to vector<32x1xbf16>
      %71 = vector.extract_strided_slice %63 {offsets = [0, 0], sizes = [32, 79], strides = [1, 1]} : vector<32x80xbf16> to vector<32x79xbf16>
      %72 = tpu.concatenate %70, %71 in 1 : vector<32x1xbf16>, vector<32x79xbf16> -> vector<32x80xbf16>
      %c32_47 = arith.constant 32 : index
      %c0_48 = arith.constant 0 : index
      %73 = vector.load %arg11[%c32_47, %c0_48] : memref<160x80xbf16, #tpu.memory_space<vmem>>, vector<32x80xbf16>
      tpu.vector_store %arg11[%c32_47, %c0_48], %72 {strides = array<i32>} : memref<160x80xbf16, #tpu.memory_space<vmem>>, vector<32x80xbf16>,
      %74 = vector.extract_strided_slice %63 {offsets = [0, 1], sizes = [32, 79], strides = [1, 1]} : vector<32x80xbf16> to vector<32x79xbf16>
      %75 = vector.extract_strided_slice %63 {offsets = [0, 78], sizes = [32, 1], strides = [1, 1]} : vector<32x80xbf16> to vector<32x1xbf16>
      %76 = tpu.concatenate %74, %75 in 1 : vector<32x79xbf16>, vector<32x1xbf16> -> vector<32x80xbf16>
      %c96_49 = arith.constant 96 : index
      %c0_50 = arith.constant 0 : index
      %77 = vector.load %arg11[%c96_49, %c0_50] : memref<160x80xbf16, #tpu.memory_space<vmem>>, vector<32x80xbf16>
      tpu.vector_store %arg11[%c96_49, %c0_50], %76 {strides = array<i32>} : memref<160x80xbf16, #tpu.memory_space<vmem>>, vector<32x80xbf16>,
      %78 = vector.extract_strided_slice %63 {offsets = [0, 2], sizes = [32, 78], strides = [1, 1]} : vector<32x80xbf16> to vector<32x78xbf16>
      %79 = vector.extract_strided_slice %63 {offsets = [0, 78], sizes = [32, 1], strides = [1, 1]} : vector<32x80xbf16> to vector<32x1xbf16>
      %80 = vector.extract_strided_slice %63 {offsets = [0, 77], sizes = [32, 1], strides = [1, 1]} : vector<32x80xbf16> to vector<32x1xbf16>
      %81 = tpu.concatenate %78, %79, %80 in 1 : vector<32x78xbf16>, vector<32x1xbf16>, vector<32x1xbf16> -> vector<32x80xbf16>
      %c128_51 = arith.constant 128 : index
      %c0_52 = arith.constant 0 : index
      %82 = vector.load %arg11[%c128_51, %c0_52] : memref<160x80xbf16, #tpu.memory_space<vmem>>, vector<32x80xbf16>
      tpu.vector_store %arg11[%c128_51, %c0_52], %81 {strides = array<i32>} : memref<160x80xbf16, #tpu.memory_space<vmem>>, vector<32x80xbf16>,
      %83 = arith.index_cast %62 : i32 to index
      %c0_53 = arith.constant 0 : index
      %c0_54 = arith.constant 0 : index
      %84 = vector.load %arg5[%83, %c0_53, %c0_54] : memref<14x32x160xbf16, #tpu.memory_space<vmem>>, vector<1x32x160xbf16>
      %85 = vector.shape_cast %84 : vector<1x32x160xbf16> to vector<32x160xbf16>
      %c0_55 = arith.constant 0 : index
      %c0_56 = arith.constant 0 : index
      %86 = vector.load %arg11[%c0_55, %c0_56] : memref<160x80xbf16, #tpu.memory_space<vmem>>, vector<160x80xbf16>
      %cst_57 = arith.constant dense<0.000000e+00> : vector<32x80xf32>
      %87 = tpu.matmul %85, %86, %cst_57 {dimension_numbers = #tpu.dot_dimension_numbers<[1], [0], [0], [1], [0, 0, 1, 1], [], []>} : vector<32x160xbf16>, vector<160x80xbf16>, vector<32x80xf32> -> vector<32x80xf32>
      %88 = arith.index_cast %62 : i32 to index
      %c0_58 = arith.constant 0 : index
      %c0_59 = arith.constant 0 : index
      %89 = vector.load %arg6[%88, %c0_58, %c0_59] : memref<14x32x1xf32, #tpu.memory_space<vmem>>, vector<1x32x1xf32>
      %90 = vector.shape_cast %89 : vector<1x32x1xf32> to vector<32x1xf32>
      %91 = vector.broadcast %90 : vector<32x1xf32> to vector<32x80xf32>
      %92 = arith.addf %87, %91 : vector<32x80xf32>
      %93 = arith.addf %60, %92 : vector<32x80xf32>
      %c0_60 = arith.constant 0 : index
      %c0_61 = arith.constant 0 : index
      %94 = vector.load %arg10[%c0_60, %c0_61] : memref<32x80xf32, #tpu.memory_space<vmem>>, vector<32x80xf32>
      tpu.vector_store %arg10[%c0_60, %c0_61], %93 {strides = array<i32>} : memref<32x80xf32, #tpu.memory_space<vmem>>, vector<32x80xf32>,
    }
    %c7_i32_10 = arith.constant 7 : i32
    %c0_11 = arith.constant 0 : index
    %c0_12 = arith.constant 0 : index
    %12 = vector.load %arg7[%c0_11, %c0_12] : memref<4x32xbf16, #tpu.memory_space<vmem>>, vector<4x32xbf16>
    %c0_13 = arith.constant 0 : index
    %c0_14 = arith.constant 0 : index
    %13 = vector.load %arg10[%c0_13, %c0_14] : memref<32x80xf32, #tpu.memory_space<vmem>>, vector<32x80xf32>
    %14 = arith.truncf %13 : vector<32x80xf32> to vector<32x80xbf16>
    %cst_15 = arith.constant dense<0.000000e+00> : vector<4x80xf32>
    %15 = tpu.matmul %12, %14, %cst_15 {dimension_numbers = #tpu.dot_dimension_numbers<[1], [0], [0], [1], [0, 0, 1, 1], [], []>} : vector<4x32xbf16>, vector<32x80xbf16>, vector<4x80xf32> -> vector<4x80xf32>
    %c0_16 = arith.constant 0 : index
    %c0_17 = arith.constant 0 : index
    %16 = vector.load %arg8[%c0_16, %c0_17] : memref<4x1xf32, #tpu.memory_space<vmem>>, vector<4x1xf32>
    %17 = vector.broadcast %16 : vector<4x1xf32> to vector<4x80xf32>
    %18 = arith.addf %15, %17 : vector<4x80xf32>
    %19 = math.tanh %18 : vector<4x80xf32>
    %c0_18 = arith.constant 0 : index
    %c0_19 = arith.constant 0 : index
    %c0_20 = arith.constant 0 : index
    %20 = vector.load %arg9[%c0_18, %c0_19, %c0_20] : memref<1x4x80xf32, #tpu.memory_space<vmem>>, vector<1x4x80xf32>
    %21 = vector.shape_cast %20 : vector<1x4x80xf32> to vector<4x80xf32>
    %22 = vector.shape_cast %19 : vector<4x80xf32> to vector<1x4x80xf32>
    tpu.vector_store %arg9[%c0_18, %c0_19, %c0_20], %22 {strides = array<i32>} : memref<1x4x80xf32, #tpu.memory_space<vmem>>, vector<1x4x80xf32>,
    return
  }
  func.func @transform_0(%arg0: i32, %arg1: i32) -> (i32, i32, i32, i32) {
    %c0_i32 = arith.constant 0 : i32
    %c0_i32_0 = arith.constant 0 : i32
    %c0_i32_1 = arith.constant 0 : i32
    return %arg0, %arg1, %c0_i32, %c0_i32_0 : i32, i32, i32, i32
  }
  func.func @transform_1(%arg0: i32, %arg1: i32) -> (i32, i32) {
    %c0_i32 = arith.constant 0 : i32
    %c0_i32_0 = arith.constant 0 : i32
    %c0_i32_1 = arith.constant 0 : i32
    return %c0_i32, %c0_i32_0 : i32, i32
  }
  func.func @transform_2(%arg0: i32, %arg1: i32) -> (i32, i32) {
    %c0_i32 = arith.constant 0 : i32
    %c0_i32_0 = arith.constant 0 : i32
    %c0_i32_1 = arith.constant 0 : i32
    return %c0_i32, %c0_i32_0 : i32, i32
  }
  func.func @transform_3(%arg0: i32, %arg1: i32) -> (i32, i32, i32) {
    %c0_i32 = arith.constant 0 : i32
    %c0_i32_0 = arith.constant 0 : i32
    %c0_i32_1 = arith.constant 0 : i32
    %c0_i32_2 = arith.constant 0 : i32
    return %c0_i32, %c0_i32_0, %c0_i32_1 : i32, i32, i32
  }
  func.func @transform_4(%arg0: i32, %arg1: i32) -> (i32, i32, i32) {
    %c0_i32 = arith.constant 0 : i32
    %c0_i32_0 = arith.constant 0 : i32
    %c0_i32_1 = arith.constant 0 : i32
    %c0_i32_2 = arith.constant 0 : i32
    return %c0_i32, %c0_i32_0, %c0_i32_1 : i32, i32, i32
  }
  func.func @transform_5(%arg0: i32, %arg1: i32) -> (i32, i32) {
    %c0_i32 = arith.constant 0 : i32
    %c0_i32_0 = arith.constant 0 : i32
    %c0_i32_1 = arith.constant 0 : i32
    return %c0_i32, %c0_i32_0 : i32, i32
  }
  func.func @transform_6(%arg0: i32, %arg1: i32) -> (i32, i32) {
    %c0_i32 = arith.constant 0 : i32
    %c0_i32_0 = arith.constant 0 : i32
    %c0_i32_1 = arith.constant 0 : i32
    return %c0_i32, %c0_i32_0 : i32, i32
  }
  func.func @transform_7(%arg0: i32, %arg1: i32) -> (i32, i32, i32) {
    %c0_i32 = arith.constant 0 : i32
    %c0_i32_0 = arith.constant 0 : i32
    return %arg0, %c0_i32, %arg1 : i32, i32, i32
  }
}

</mosaic_0001>

<bundles_post_ra>
// kernel: generator_forward.1
= control target key start
LH: loop header
LB: loop body
LE: loop exit
PB: predicated region body
PF: predicated region fallthrough
CT: control target
= control target key end

     0   :  { %12 = vsyncpa [#allocation5], 0  ;;  %s1561_s0 = inlined_call_operand.vmem [shape: bf16[2,1,4,80], index: 0, kind: input, shape index: {}]   ;;  %s1562_s1 = inlined_call_operand.vmem [shape: bf16[32,4], index: 1, kind: input, shape index: {}]   ;;  %s1563_s2 = inlined_call_operand.vmem [shape: f32[32,1], index: 2, kind: input, shape index: {}]   ;;  %s1564_s3 = inlined_call_operand.vmem [shape: bf16[14,32,160], index: 3, kind: input, shape index: {}]   ;;  %s1565_s4 = inlined_call_operand.vmem [shape: f32[14,32,1], index: 4, kind: input, shape index: {}]   ;;  %s1566_s5 = inlined_call_operand.vmem [shape: bf16[4,32], index: 5, kind: input, shape index: {}]   ;;  %s1567_s6 = inlined_call_operand.vmem [shape: f32[4,1], index: 6, kind: input, shape index: {}]   ;;  %s1568_s7 = inlined_call_operand.hbm [shape: f32[2,4,80], index: 7, kind: output, shape index: {}]  }
   0x1   :  { %14 = vsyncpa [#allocation5 + $0x1], 0  ;;  %s1263_s24 = smov 0   ;;  %s1265_s25 = smov 0  }
   0x2   :  { %s1267_s26 = smov 0   ;;  %s1269_s27 = smov 0  }
   0x3   :  { %s1271_s28 = smov 0   ;;  %s1273_s29 = smov 0  }
   0x4 LB: > { %s964_s30 = sadd.s32 4294967295, %s1208_s29   ;;  %s965_s8 = sadd.s32 4294967294, %s1208_s29   ;;  %s1208_s29 = sphi %s1273_s29, %s20_s29   ;;  %s1204_s28 = sphi %s1271_s28, %s1579_s28   ;;  %s1200_s27 = sphi %s1269_s27, %s1578_s27   ;;  %s1196_s26 = sphi %s1267_s26, %s1577_s26   ;;  %s1192_s25 = sphi %s1265_s25, %s1576_s25   ;;  %s1188_s24 = sphi %s1263_s24, %s1575_s24  }
   0x5   : > { %s32_s9 = sadd.s32 1, %s1204_s28  ;;  %s195_s10 = sadd.s32 1, %s1196_s26 }
   0x6   : > { %p34_p0 = scmp.ge.s32.totalorder %s32_s9, 2  ;;  %p205_p1 = scmp.ne.s32.totalorder %s1196_s26, %s1192_s25 }
   0x7   : > { %p206_p2 = scmp.eq.s32.totalorder %s964_s30, 1  ;;  %p211_p3 = scmp.ne.s32.totalorder %s1192_s25, %s1188_s24 }
   0x8   : > { %s1581_s9 = smov (%p34_p0, %s32_s9), 0  ;;  %p212_p5 = scmp.eq.s32.totalorder %s965_s8, 1 }
   0x9   : > { %p1303_p4 = por %p206_p2, %p205_p1  ;;  %s190_s12 = ssub.s32 %s1204_s28, %s1581_s9 }
   0xa   : > { %p968_p6 = scmp.ge.s32.totalorder %s1208_s29, 1  ;;  %p193_p7 = scmp.eq.s32.totalorder %s190_s12, 0 }
   0xb   : > { %p1310_p8 = por %p212_p5, %p211_p3  ;;  %p258_p9 = scmp.lt.s32.totalorder %s1208_s29, 3 }
   0xc   : > { %s1316_s14 = scalar_select %p193_p7, %s1196_s26, %s195_s10  }
   0xd   : > { %p259_p10 = pnand %p968_p6, %p258_p9 }
   0xe   : > { %s1569_s15 = sand.u32 (!%p259_p10), 1, %s1192_s25   ;;  %p292_p11 = scmp.lt.s32.totalorder (!%p259_p10), %s1200_s27, 1  ;;  %v1107_v0 = vld [vmem:[%s1562_s1] sm:$0xff] (!%p259_p10)   ;;  %vm339_vm0 = vcmask (!%p259_p10), 31744   ;;  %v307_v1 = vld [vmem:[%s1563_s2 + $0x10] sm:$0xff] (!%p259_p10)  ;;  %v1214_v2 = vmov (!%p259_p10), 0  }
   0xf   : > { %262 = sbr.rel (%p259_p10) target bundleno = 1297 (0x511), region = 48  ;;  %s1325_s18 = sshll.u32 (!%p259_p10), %s1569_s15, 2  ;;  %1021 = vmatprep.mubr.msk.bf16.mxu0 (!%p259_p10), %vm339_vm0, %v1107_v0  ;;  %1106 = vset.pattern.permute.xlu1 (!%p259_p10), %v1214_v2  ;;  %v305_v3 = vld [vmem:[%s1563_s2] sm:$0xff] (!%p259_p10)  ;;  %vm346_vm1 = vcmask (!%p259_p10), 1041408   ;;  %v308_v4 = vld [vmem:[%s1563_s2 + $0x18] sm:$0xff] (!%p259_p10)  ;;  %v306_v5 = vld [vmem:[%s1563_s2 + $0x8] sm:$0xff] (!%p259_p10) }
  0x10   : > { %1105 = vset.pattern.permute.xlu0 (!%p259_p10), %v1214_v2  ;;  %321 = vperm.xlu1 (!%p259_p10), %1106, %v307_v1   ;;  %v1108_v8 = vld [vmem:[%s1562_s1 + $0x8] sm:$0xff] (!%p259_p10)   ;;  %vm407_vm2 = vcmask (!%p259_p10), 654336  }
  0x11   : > { %311 = vperm.xlu0 (!%p259_p10), %1105, %v305_v3  }
  0x14   : > { %326 = vperm.xlu1 (!%p259_p10), %1106, %v308_v4  }
  0x15   : > { %316 = vperm.xlu0 (!%p259_p10), %1105, %v306_v5  }
  0x16   : > { %s293_s21 = scalar_select %p292_p11, %s1200_s27, 1 }
  0x18   : > { %s970_s30 = sshll.u32 %s293_s21, 1 }
  0x19   : > { %s298_s17 = scalar_lea.vmem %s1561_s0, %s970_s30  ;;  %s1355_s30 = smov 0  }
  0x1a   : > { %v304_v6 = vld [vmem:[%s298_s17] sm:$0x3] }
  0x1b   : > { %1033 = vmatprep.subr.msk.bf16.mxu0 %vm346_vm1, %v304_v6  ;;  %v348_v7 = vsel %vm346_vm1, %v304_v6, 0 }
  0x1c   : > { %1020 = vmatpush3.bf16.msra.mxu0 %v348_v7 }
  0x1f   : > { %1022 = vmatmul.mubr.msk.bf16.vlgmr.msra.gmra.mrb[0].mxu0 %vm339_vm0, %v1108_v8 }
  0x8f   : > { %v322_v9 = vpop.permute.xlu1 %321 }
  0x90   : > { %v312_v10 = vpop.permute.xlu0 %311 }
  0x93   : > { %v327_v14 = vpop.permute.xlu1 %326 }
  0x94   : > { %v317_v17 = vpop.permute.xlu0 %316 }
  0xf2   : > { %v1023_v11 = vpop.f32.mrb[0].mxu0 }
  0xf3   : > { %v393_v12 = vadd.f32 %v1023_v11, %v322_v9  ;;  %v384_v13 = vpop.f32.mrb[1].mxu0 }
  0xf4   : > { %v385_v15 = vadd.f32 %v384_v13, %v312_v10  ;;  %v1024_v16 = vpop.f32.mrb[2].mxu0 }
  0xf5   : > { %v401_v18 = vmul.f32 0.01, %v393_v12  ;;  %v396_v19 = vadd.f32 %v1024_v16, %v327_v14  ;;  %v387_v20 = vpop.f32.mrb[3].mxu0 }
  0xf6   : > { %v399_v21 = vmul.f32 0.01, %v385_v15  ;;  %v388_v22 = vadd.f32 %v387_v20, %v317_v17 }
  0xf7   : > { %v405_v23 = vmax.f32 %v393_v12, %v401_v18  ;;  %v402_v24 = vmul.f32 0.01, %v396_v19 }
  0xf8   : > { %v403_v25 = vmax.f32 %v385_v15, %v399_v21  ;;  %v400_v26 = vmul.f32 0.01, %v388_v22 }
  0xf9   : > { %410 = vst.msk [vmem:[#allocation2 + $0x10] sm:$0xff] %vm407_vm2, %v405_v23  ;;  %v406_v27 = vmax.f32 %v396_v19, %v402_v24 }
  0xfa   : > { %408 = vst.msk [vmem:[#allocation2] sm:$0xff] %vm407_vm2, %v403_v25  ;;  %v404_v28 = vmax.f32 %v388_v22, %v400_v26 }
  0xfb   : > { %411 = vst.msk [vmem:[#allocation2 + $0x18] sm:$0xff] %vm407_vm2, %v406_v27 }
  0xfc   : > { %409 = vst.msk [vmem:[#allocation2 + $0x8] sm:$0xff] %vm407_vm2, %v404_v28 }
  0xfd LB: >> { %s1215_s8 = smov 126   ;;  %v1216_v35 = vmov 0   ;;  %s1217_s10 = smov 2   ;;  %vm548_vm3 = vcmask 261120   ;;  %vm437_vm4 = vcmask 7168   ;;  %vm478_vm5 = vcmask 637952   ;;  %s1212_s30 = sphi %s1355_s30, %s417_s30  }
  0xfe   : >> { %555 = vmatprep.subr.bf16.mxu0 %v1216_v35  ;;  %1109 = vset.pattern.permute.xlu0 %v1216_v35  ;;  %s1218_s12 = smov 127   ;;  %s1219_s16 = smov 1   ;;  %vm444_vm6 = vcmask 15360   ;;  %vm471_vm7 = vcmask 646144  }
  0xff   : >> { %1110 = vset.pattern.permute.xlu1 %v1216_v35  ;;  %744 = vmatprep.subr.bf16.mxu1 %v1216_v35  ;;  %s1009_s17 = sshll.u32 %s1212_s30, 6  ;;  %s417_s30 = sadd.s32 1, %s1212_s30  }
 0x100   : >> { %v1364_v31 = vld [vmem:[#allocation2 + $0x10] sm:$0xff]  ;;  %s1390_s22 = scalar_lea.vmem %s1564_s3, %s1009_s17  ;;  %s1397_s21 = scalar_lea.vmem %s1565_s4, %s1009_s17 }
 0x101   : >> { %v1360_v29 = vld [vmem:[#allocation2] sm:$0xff]  ;;  %v507_v38 = vld [vmem:[%s1397_s21 + $0x8] sm:$0xff]  ;;  %v508_v39 = vld [vmem:[%s1397_s21 + $0x10] sm:$0xff]  ;;  %p414_p12 = scmp.ge.s32.totalorder %s417_s30, 7  }
 0x102   : >> { %v1368_v33 = vld [vmem:[#allocation2 + $0x18] sm:$0xff]  ;;  %v1113_v36 = vld [vmem:[%s1390_s22 + $0x4] ss:$8 sps:$4 sm:$0xff]   ;;  %v1111_v8 = vld [vmem:[%s1390_s22] ss:$8 sps:$4 sm:$0xff]   ;;  %vm1221_vm8 = vmmov (%p414_p12), 0  }
 0x103   : >> { %v1362_v30 = vld [vmem:[#allocation2 + $0x8] sm:$0xff]  ;;  %v424_v34 = vpack.c.bf16 %v1368_v33, %v1364_v31  ;;  %983 = vmatprep.mubr.msk.bf16.mxu0 %vm548_vm3, %v1113_v36  ;;  %v506_v37 = vld [vmem:[%s1397_s21] sm:$0xff]  ;;  %v509_v40 = vld [vmem:[%s1397_s21 + $0x18] sm:$0xff]  ;;  %vm859_vm9 = vcmask (%p414_p12), 650240   ;;  %s1574_s23 = sand.u32 (%p414_p12), 1, %s1192_s25  }
 0x104   : >> { %v423_v32 = vpack.c.bf16 %v1362_v30, %v1360_v29  ;;  %v1114_v9 = vld [vmem:[%s1390_s22 + $0x14] ss:$8 sps:$4 sm:$0xff]   ;;  %v1116_v10 = vld [vmem:[%s1390_s22 + $0x10] ss:$8 sps:$4 sm:$0xff]   ;;  %s862_s15 = scalar_lea.sflag (%p414_p12), [#allocation5], %s1574_s23 }
 0x105   : >> { %431 = vrot.lane.b32.xlu1 %v424_v34, %s1215_s8  ;;  %426 = vst.msk [vmem:[#allocation3 + $0x28] sm:$0xff] %vm407_vm2, %v424_v34 }
 0x106   : >> { %429 = vrot.lane.b32.xlu0 %v423_v32, %s1215_s8  ;;  %425 = vst.msk [vmem:[#allocation3 + $0x20] sm:$0xff] %vm407_vm2, %v423_v32 }
 0x109   : >> { %435 = vrot.lane.b32.xlu1 %v424_v34, %s1217_s10 }
 0x10a   : >> { %433 = vrot.lane.b32.xlu0 %v423_v32, %s1217_s10 }
 0x10c   : >> { %v499_v3 = vld [vmem:[#allocation3 + $0x28] sm:$0xff] }
 0x10d   : >> { %457 = vrot.lane.b32.xlu1 %v423_v32, %s1219_s16  ;;  %v498_v1 = vld [vmem:[#allocation3 + $0x20] sm:$0xff] }
 0x10e   : >> { %453 = vrot.lane.b32.xlu0 %v423_v32, %s1218_s12 }
 0x111   : >> { %459 = vrot.lane.b32.xlu1 %v424_v34, %s1219_s16 }
 0x112   : >> { %455 = vrot.lane.b32.xlu0 %v424_v34, %s1218_s12 }
 0x115   : >> { %517 = vperm.xlu1 %1110, %v507_v38  }
 0x116   : >> { %512 = vperm.xlu0 %1109, %v506_v37  }
 0x119   : >> { %522 = vperm.xlu1 %1110, %v508_v39  }
 0x11a   : >> { %527 = vperm.xlu0 %1109, %v509_v40  }
 0x177   : >> { %v432_v42 = vpop.permute.xlu1 %431 }
 0x178   : >> { %v430_v41 = vpop.permute.xlu0 %429  ;;  %v443_v43 = vsel %vm437_vm4, %v432_v42, %v424_v34  ;;  %v480_v44 = vsel %vm478_vm5, %v432_v42, %v424_v34  ;;  %v994_v42 = vld [vmem:[%s1397_s21 + $0x28] sm:$0xff] }
 0x179   : >> { %v440_v45 = vsel %vm437_vm4, %v430_v41, %v423_v32  ;;  %v479_v46 = vsel %vm478_vm5, %v430_v41, %v423_v32 }
 0x17b   : >> { %v436_v50 = vpop.permute.xlu1 %435 }
 0x17c   : >> { %v434_v47 = vpop.permute.xlu0 %433  ;;  %v449_v51 = vsel %vm444_vm6, %v443_v43, %v436_v50  ;;  %v483_v52 = vsel %vm471_vm7, %v480_v44, %v436_v50  ;;  %v993_v43 = vld [vmem:[%s1397_s21 + $0x20] sm:$0xff]  ;;  %v996_v44 = vld [vmem:[%s1397_s21 + $0x38] sm:$0xff] }
 0x17d   : >> { %v446_v48 = vsel %vm444_vm6, %v440_v45, %v434_v47  ;;  %v481_v49 = vsel %vm471_vm7, %v479_v46, %v434_v47  ;;  %452 = vst.msk [vmem:[#allocation3 + $0x8] sm:$0xff] %vm407_vm2, %v449_v51  ;;  %486 = vst.msk [vmem:[#allocation3 + $0x48] sm:$0xff] %vm407_vm2, %v483_v52  ;;  %v995_v45 = vld [vmem:[%s1397_s21 + $0x30] sm:$0xff]  ;;  %v1119_v46 = vld [vmem:[%s1390_s22 + $0x24] ss:$8 sps:$4 sm:$0xff]  }
 0x17e   : >> { %451 = vst.msk [vmem:[#allocation3] sm:$0xff] %vm407_vm2, %v446_v48  ;;  %485 = vst.msk [vmem:[#allocation3 + $0x40] sm:$0xff] %vm407_vm2, %v481_v49  ;;  %1001 = vmatprep.mubr.msk.bf16.mxu1 %vm548_vm3, %v1119_v46 }
 0x17f   : >> { %v458_v54 = vpop.permute.xlu1 %457 }
 0x180   : >> { %v454_v53 = vpop.permute.xlu0 %453 }
 0x181   : >> { %v463_v55 = vsel %vm437_vm4, %v454_v53, %v458_v54  ;;  %v472_v56 = vsel %vm471_vm7, %v454_v53, %v458_v54 }
 0x182   : >> { %469 = vst.msk [vmem:[#allocation3 + $0x10] sm:$0xff] %vm407_vm2, %v463_v55  ;;  %476 = vst.msk [vmem:[#allocation3 + $0x30] sm:$0xff] %vm407_vm2, %v472_v56 }
 0x183   : >> { %v460_v59 = vpop.permute.xlu1 %459 }
 0x184   : >> { %v456_v57 = vpop.permute.xlu0 %455  ;;  %v495_v62 = vld [vmem:[#allocation3 + $0x8] sm:$0xff] }
 0x185   : >> { %v494_v58 = vld [vmem:[#allocation3] sm:$0xff]  ;;  %v467_v60 = vsel %vm437_vm4, %v456_v57, %v460_v59  ;;  %v474_v61 = vsel %vm471_vm7, %v456_v57, %v460_v59  ;;  %v503_v7 = vld [vmem:[#allocation3 + $0x48] sm:$0xff] }
 0x186   : >> { %556 = vmatpush1.bf16.msra.mxu0 %v494_v58  ;;  %470 = vst.msk [vmem:[#allocation3 + $0x18] sm:$0xff] %vm407_vm2, %v467_v60  ;;  %477 = vst.msk [vmem:[#allocation3 + $0x38] sm:$0xff] %vm407_vm2, %v474_v61  ;;  %v502_v6 = vld [vmem:[#allocation3 + $0x40] sm:$0xff] }
 0x187   : >> { %557 = vmatprep.subr.bf16.mxu0 %v1216_v35 }
 0x189   : >> { %v496_v63 = vld [vmem:[#allocation3 + $0x10] sm:$0xff] }
 0x18a   : >> { %558 = vmatpush1.bf16.msra.mxu0 %v495_v62  ;;  %v500_v4 = vld [vmem:[#allocation3 + $0x30] sm:$0xff] }
 0x18b   : >> { %559 = vmatprep.subr.bf16.mxu0 %v1216_v35 }
 0x18d   : >> { %v497_v0 = vld [vmem:[#allocation3 + $0x18] sm:$0xff] }
 0x18e   : >> { %560 = vmatpush1.bf16.msra.mxu0 %v496_v63  ;;  %v501_v5 = vld [vmem:[#allocation3 + $0x38] sm:$0xff] }
 0x18f   : >> { %561 = vmatprep.subr.bf16.mxu0 %v1216_v35 }
 0x192   : >> { %562 = vmatpush1.bf16.msra.mxu0 %v497_v0 }
 0x193   : >> { %563 = vmatprep.subr.bf16.mxu0 %v1216_v35 }
 0x194   : >> { %v518_v13 = vpop.permute.xlu1 %517 }
 0x195   : >> { %v513_v11 = vpop.permute.xlu0 %512 }
 0x196   : >> { %564 = vmatpush1.bf16.msra.mxu0 %v498_v1 }
 0x197   : >> { %565 = vmatprep.subr.bf16.mxu0 %v1216_v35 }
 0x198   : >> { %v523_v23 = vpop.permute.xlu1 %522 }
 0x199   : >> { %v528_v28 = vpop.permute.xlu0 %527 }
 0x19a   : >> { %566 = vmatpush1.bf16.msra.mxu0 %v499_v3 }
 0x19b   : >> { %567 = vmatprep.subr.bf16.mxu0 %v1216_v35 }
 0x19e   : >> { %568 = vmatpush1.bf16.msra.mxu0 %v500_v4 }
 0x19f   : >> { %569 = vmatprep.subr.bf16.mxu0 %v1216_v35 }
 0x1a2   : >> { %570 = vmatpush1.bf16.msra.mxu0 %v501_v5 }
 0x1a3   : >> { %571 = vmatprep.subr.bf16.mxu0 %v1216_v35 }
 0x1a6   : >> { %572 = vmatpush1.bf16.msra.mxu0 %v502_v6 }
 0x1a7   : >> { %573 = vmatprep.subr.bf16.mxu0 %v1216_v35 }
 0x1aa   : >> { %574 = vmatpush1.bf16.msra.mxu0 %v503_v7 }
 0x1ad   : >> { %588 = vmatmul.mubr.bf16.vlgmr.msra.gmra.mrb[0].mxu0 %v1111_v8 }
 0x1ae   : >> { %984 = vmatprep.mubr.msk.bf16.mxu0 %vm548_vm3, %v1114_v9 }
 0x1b5   : >> { %596 = vmatmul.mubr.bf16.gmra.mrb[4].mxu0 %v1116_v10 }
 0x280   : >> { %v589_v12 = vpop.f32.mrb[0].mxu0 }
 0x281   : >> { %v590_v14 = vadd.f32 %v589_v12, %v513_v11  ;;  %v591_v15 = vpop.f32.mrb[1].mxu0 }
 0x282   : >> { %v592_v16 = vpop.f32.mrb[2].mxu0  ;;  %v1120_v15 = vld [vmem:[%s1390_s22 + $0x34] ss:$8 sps:$4 sm:$0xff]  }
 0x283   : >> { %v604_v17 = vmul.f32 0.01, %v590_v14  ;;  %v593_v18 = vadd.f32 %v592_v16, %v518_v13  ;;  %v594_v19 = vpop.f32.mrb[3].mxu0  ;;  %v1122_v16 = vld [vmem:[%s1390_s22 + $0x30] ss:$8 sps:$4 sm:$0xff]  }
 0x285   : >> { %v605_v20 = vmul.f32 0.01, %v593_v18  ;;  %v608_v21 = vmax.f32 %v590_v14, %v604_v17  ;;  %v1117_v14 = vld [vmem:[%s1390_s22 + $0x20] ss:$8 sps:$4 sm:$0xff]  }
 0x287   : >> { %v609_v22 = vmax.f32 %v593_v18, %v605_v20 }
 0x288   : >> { %v597_v24 = vpop.f32.mrb[4].mxu0 }
 0x289   : >> { %v617_v25 = vpack.c.bf16 %v609_v22, %v608_v21  ;;  %v598_v26 = vadd.f32 %v597_v24, %v523_v23  ;;  %v599_v27 = vpop.f32.mrb[5].mxu0 }
 0x28a   : >> { %v600_v32 = vpop.f32.mrb[6].mxu0 }
 0x28b   : >> { %619 = vst.msk [vmem:[#allocation3 + $0x20] sm:$0xff] %vm407_vm2, %v617_v25  ;;  %v606_v34 = vmul.f32 0.01, %v598_v26  ;;  %v601_v36 = vadd.f32 %v600_v32, %v528_v28  ;;  %v602_v37 = vpop.f32.mrb[7].mxu0  ;;  %627 = vrot.lane.b32.xlu0 %v617_v25, %s1217_s10  ;;  %623 = vrot.lane.b32.xlu1 %v617_v25, %s1215_s8 }
 0x28d   : >> { %v607_v38 = vmul.f32 0.01, %v601_v36  ;;  %v610_v39 = vmax.f32 %v598_v26, %v606_v34 }
 0x28f   : >> { %v611_v40 = vmax.f32 %v601_v36, %v607_v38 }
 0x291   : >> { %v618_v41 = vpack.c.bf16 %v611_v40, %v610_v39 }
 0x292   : >> { %v688_v8 = vld [vmem:[#allocation3 + $0x20] sm:$0xff] }
 0x293   : >> { %620 = vst.msk [vmem:[#allocation3 + $0x28] sm:$0xff] %vm407_vm2, %v618_v41  ;;  %629 = vrot.lane.b32.xlu0 %v618_v41, %s1217_s10  ;;  %625 = vrot.lane.b32.xlu1 %v618_v41, %s1215_s8  ;;  %s1005_s10 = sshll.u32 (%p414_p12), %s1200_s27, 6  ;;  %s1222_s27 = smov (%p414_p12), [#allocation4]  }
 0x294   : > { %s1510_s20 = scalar_lea.hbm (%p414_p12), %s1568_s7, %s1005_s10  ;;  %s1130_s30 = sshll.u32 (%p414_p12), %s1222_s27, 4  ;;  %s1131_s30 = int_to_ptr.vmem [resolvable:$false] %s1130_s30 }
 0x295   : > { %s1132_s8 = scalar_lea.vmem (%p414_p12), %s1131_s30, 128 }
 0x297   : >> { %649 = vrot.lane.b32.xlu0 %v617_v25, %s1219_s16  ;;  %645 = vrot.lane.b32.xlu1 %v617_v25, %s1218_s12 }
 0x29a   : >> { %v689_v9 = vld [vmem:[#allocation3 + $0x28] sm:$0xff] }
 0x29b   : >> { %651 = vrot.lane.b32.xlu0 %v618_v41, %s1219_s16  ;;  %647 = vrot.lane.b32.xlu1 %v618_v41, %s1218_s12  ;;  %s1572_s12 = scalar_lea.vmem (%p414_p12), [#allocation4], %s1325_s18 }
 0x29c   : > { %s876_s16 = sshll.u32 (%p414_p12), %s1572_s12, 4  ;;  %s1573_s22 = smov (%p414_p12), %s1572_s12  ;;  %s1512_s16 = int_to_ptr.vmem [resolvable:$true] %s876_s16 }
 0x29d   : > { %s1126_s21 = scalar_lea.vmem (%p414_p12), %s1512_s16, 64  ;;  %p1133_p2 = scmp.lt.s32.totalorder (%p414_p12), %s1512_s16, %s1131_s30 }
 0x29e   : > { %p1127_p13 = scmp.ne.s32.totalorder (%p414_p12), %s1512_s16, %s1126_s21  ;;  %p1134_p3 = scmp.lt.s32.totalorder (%p414_p12), %s1132_s8, %s1126_s21 }
 0x29f   : >> { %707 = vperm.xlu0 %1109, %v994_v42   ;;  %702 = vperm.xlu1 %1110, %v993_v43  }
 0x2a0   : > { %p1128_p0 = pnand (%p414_p12), %p1127_p13, %p1303_p4  ;;  %p1135_p5 = por (%p414_p12), %p1134_p3, %p1133_p2 }
 0x2a2   : > { %p1129_p1 = pneg (%p414_p12), %p1128_p0 }
 0x2a3   : >> { %717 = vperm.xlu0 %1109, %v996_v44   ;;  %712 = vperm.xlu1 %1110, %v995_v45  }
 0x2a4   : > { %p1136_p6 = pnand (%p414_p12), %p1135_p5, %p1129_p1 }
 0x2a7   : > { %1123 = vset.pattern.permute.xlu0 (%p414_p12), %v1214_v2  ;;  %v801_v2 = vld [vmem:[%s1566_s5] sm:$0x3] (%p414_p12) }
 0x2fd   : >> { %v628_v47 = vpop.permute.xlu0 %627  ;;  %v624_v48 = vpop.permute.xlu1 %623 }
 0x2fe   : >> { %v633_v49 = vsel %vm437_vm4, %v624_v48, %v617_v25  ;;  %v669_v50 = vsel %vm478_vm5, %v624_v48, %v617_v25 }
 0x2ff   : >> { %v638_v51 = vsel %vm444_vm6, %v633_v49, %v628_v47  ;;  %v671_v52 = vsel %vm471_vm7, %v669_v50, %v628_v47 }
 0x300   : >> { %643 = vst.msk [vmem:[#allocation3] sm:$0xff] %vm407_vm2, %v638_v51  ;;  %675 = vst.msk [vmem:[#allocation3 + $0x40] sm:$0xff] %vm407_vm2, %v671_v52 }
 0x305   : >> { %v630_v53 = vpop.permute.xlu0 %629  ;;  %v626_v54 = vpop.permute.xlu1 %625 }
 0x306   : >> { %v636_v55 = vsel %vm437_vm4, %v626_v54, %v618_v41  ;;  %v670_v56 = vsel %vm478_vm5, %v626_v54, %v618_v41 }
 0x307   : >> { %v641_v57 = vsel %vm444_vm6, %v636_v55, %v630_v53  ;;  %v673_v58 = vsel %vm471_vm7, %v670_v56, %v630_v53  ;;  %v684_v59 = vld [vmem:[#allocation3] sm:$0xff] }
 0x308   : >> { %644 = vst.msk [vmem:[#allocation3 + $0x8] sm:$0xff] %vm407_vm2, %v641_v57  ;;  %676 = vst.msk [vmem:[#allocation3 + $0x48] sm:$0xff] %vm407_vm2, %v673_v58  ;;  %745 = vmatpush1.bf16.msra.mxu1 %v684_v59  ;;  %v692_v12 = vld [vmem:[#allocation3 + $0x40] sm:$0xff] }
 0x309   : >> { %v650_v60 = vpop.permute.xlu0 %649  ;;  %v646_v61 = vpop.permute.xlu1 %645  ;;  %746 = vmatprep.subr.bf16.mxu1 %v1216_v35 }
 0x30a   : >> { %v655_v62 = vsel %vm437_vm4, %v646_v61, %v650_v60  ;;  %v663_v63 = vsel %vm471_vm7, %v646_v61, %v650_v60 }
 0x30b   : >> { %661 = vst.msk [vmem:[#allocation3 + $0x10] sm:$0xff] %vm407_vm2, %v655_v62  ;;  %667 = vst.msk [vmem:[#allocation3 + $0x30] sm:$0xff] %vm407_vm2, %v663_v63 }
 0x30d   : >> { %v652_v0 = vpop.permute.xlu0 %651  ;;  %v648_v1 = vpop.permute.xlu1 %647 }
 0x30e   : >> { %v659_v3 = vsel %vm437_vm4, %v648_v1, %v652_v0  ;;  %v665_v4 = vsel %vm471_vm7, %v648_v1, %v652_v0 }
 0x30f   : >> { %662 = vst.msk [vmem:[#allocation3 + $0x18] sm:$0xff] %vm407_vm2, %v659_v3  ;;  %668 = vst.msk [vmem:[#allocation3 + $0x38] sm:$0xff] %vm407_vm2, %v665_v4  ;;  %v685_v5 = vld [vmem:[#allocation3 + $0x8] sm:$0xff] }
 0x310   : >> { %747 = vmatpush1.bf16.msra.mxu1 %v685_v5  ;;  %v693_v13 = vld [vmem:[#allocation3 + $0x48] sm:$0xff] }
 0x311   : >> { %748 = vmatprep.subr.bf16.mxu1 %v1216_v35 }
 0x312   : >> { %v686_v6 = vld [vmem:[#allocation3 + $0x10] sm:$0xff] }
 0x313   : >> { %v690_v10 = vld [vmem:[#allocation3 + $0x30] sm:$0xff] }
 0x314   : >> { %749 = vmatpush1.bf16.msra.mxu1 %v686_v6 }
 0x315   : >> { %750 = vmatprep.subr.bf16.mxu1 %v1216_v35 }
 0x316   : >> { %v687_v7 = vld [vmem:[#allocation3 + $0x18] sm:$0xff] }
 0x317   : >> { %v691_v11 = vld [vmem:[#allocation3 + $0x38] sm:$0xff] }
 0x318   : >> { %751 = vmatpush1.bf16.msra.mxu1 %v687_v7 }
 0x319   : >> { %752 = vmatprep.subr.bf16.mxu1 %v1216_v35 }
 0x31c   : >> { %753 = vmatpush1.bf16.msra.mxu1 %v688_v8 }
 0x31d   : >> { %754 = vmatprep.subr.bf16.mxu1 %v1216_v35 }
 0x31e   : >> { %v703_v17 = vpop.permute.xlu1 %702  ;;  %v708_v21 = vpop.permute.xlu0 %707 }
 0x320   : >> { %755 = vmatpush1.bf16.msra.mxu1 %v689_v9 }
 0x321   : >> { %756 = vmatprep.subr.bf16.mxu1 %v1216_v35 }
 0x322   : >> { %v713_v26 = vpop.permute.xlu1 %712  ;;  %v718_v34 = vpop.permute.xlu0 %717 }
 0x324   : >> { %757 = vmatpush1.bf16.msra.mxu1 %v690_v10 }
 0x325   : >> { %758 = vmatprep.subr.bf16.mxu1 %v1216_v35 }
 0x328   : >> { %759 = vmatpush1.bf16.msra.mxu1 %v691_v11 }
 0x329   : >> { %760 = vmatprep.subr.bf16.mxu1 %v1216_v35 }
 0x32c   : >> { %761 = vmatpush1.bf16.msra.mxu1 %v692_v12 }
 0x32d   : >> { %762 = vmatprep.subr.bf16.mxu1 %v1216_v35 }
 0x330   : >> { %763 = vmatpush1.bf16.msra.mxu1 %v693_v13 }
 0x333   : >> { %777 = vmatmul.mubr.bf16.vlgmr.msra.gmra.mrb[0].mxu1 %v1117_v14 }
 0x334   : >> { %1002 = vmatprep.mubr.msk.bf16.mxu1 %vm548_vm3, %v1120_v15 }
 0x33b   : >> { %785 = vmatmul.mubr.bf16.gmra.mrb[4].mxu1 %v1122_v16 }
 0x406   : >> { %v778_v18 = vpop.f32.mrb[0].mxu1 }
 0x407   : >> { %v779_v19 = vadd.f32 %v778_v18, %v703_v17  ;;  %v780_v20 = vpop.f32.mrb[1].mxu1 }
 0x408   : >> { %v781_v22 = vpop.f32.mrb[2].mxu1 }
 0x409   : >> { %v793_v23 = vadd.f32 %v779_v19, %v1360_v29  ;;  %v782_v24 = vadd.f32 %v781_v22, %v708_v21  ;;  %v783_v25 = vpop.f32.mrb[3].mxu1 }
 0x40b   : >> { %797 = vst.msk [vmem:[#allocation2] sm:$0xff] %vm407_vm2, %v793_v23  ;;  %v794_v35 = vadd.f32 %v782_v24, %v1362_v30 }
 0x40d   : >> { %798 = vst.msk [vmem:[#allocation2 + $0x8] sm:$0xff] %vm407_vm2, %v794_v35 }
 0x40e   : >> { %v786_v27 = vpop.f32.mrb[4].mxu1 }
 0x40f   : >> { %v787_v28 = vadd.f32 %v786_v27, %v713_v26  ;;  %v788_v32 = vpop.f32.mrb[5].mxu1  ;;  %416 = sbr.rel (!%p414_p12) target bundleno = 253 (0xfd), region = 94 }
 0x410   : >> { %v789_v36 = vpop.f32.mrb[6].mxu1 }
 0x411   : >> { %v795_v37 = vadd.f32 %v787_v28, %v1364_v31  ;;  %v790_v38 = vadd.f32 %v789_v36, %v718_v34  ;;  %v791_v39 = vpop.f32.mrb[7].mxu1  ;;  %v1220_v31 = vmov (%p414_p12), 0.0  }
 0x412   : > { %v802_v30 = vld [vmem:[#allocation2] sm:$0xff] (%p414_p12)  ;;  %1025 = vmatprep.subr.bf16.mxu0 (%p414_p12), %v1220_v31  ;;  %1029 = vmatprep.mubr.msk.bf16.mxu0 (%p414_p12), %vm1221_vm8, %v1220_v31 }
 0x413   : >> { %799 = vst.msk [vmem:[#allocation2 + $0x10] sm:$0xff] %vm407_vm2, %v795_v37  ;;  %v796_v29 = vadd.f32 %v790_v38, %v1368_v33  ;;  %v808_v33 = vld [vmem:[%s1567_s6] sm:$0xf] (%p414_p12) }
 0x414   : > { %v803_v40 = vld [vmem:[#allocation2 + $0x8] sm:$0xff] (%p414_p12)  ;;  %811 = vperm.xlu0 (%p414_p12), %1123, %v808_v33  }
 0x415   : >> { %800 = vst.msk [vmem:[#allocation2 + $0x18] sm:$0xff] %vm407_vm2, %v796_v29  ;;  %v806_v42 = vpack.c.bf16 (%p414_p12), %v803_v40, %v802_v30 }
 0x417   : > { %1026 = vmatpush3.bf16.msra.mxu0 %v806_v42 }
 0x418   : > { %1027 = vmatprep.subr.bf16.mxu0 %v1220_v31 }
 0x41a   : > { %v804_v41 = vld [vmem:[#allocation2 + $0x10] sm:$0xff] }
 0x41c   : > { %v805_v43 = vld [vmem:[#allocation2 + $0x18] sm:$0xff] }
 0x41d   : > { %v807_v44 = vpack.c.bf16 %v805_v43, %v804_v41 }
 0x41f   : > { %1028 = vmatpush3.bf16.msra.mxu0 %v807_v44 }
 0x422   : > { %1030 = vmatmul.mubr.msk.bf16.vlgmr.msra.gmra.mrb[0].mxu0 %vm548_vm3, %v801_v2 }
 0x493   : > { %v812_v45 = vpop.permute.xlu0 %811 }
 0x4f5   : > { %v852_v46 = vpop.f32.mrb[0].mxu0 }
 0x4f6   : > { %v853_v47 = vadd.f32 %v852_v46, %v812_v45  ;;  %v1031_v48 = vpop.f32.mrb[1].mxu0 }
 0x4f7   : > { %v855_v49 = vpop.f32.mrb[2].mxu0 }
 0x4f8   : > { %1124 = vtanh.f32 %v853_v47  ;;  %v1032_v50 = vpop.f32.mrb[3].mxu0 }
 0x502   : > { %v1125_v51 = vpop.eup %1124 }
 0x503   : > { %860 = vst.msk [vmem:[%s1573_s22] sm:$0xf] %vm859_vm9, %v1125_v51 }
 0x504   : > { %1139 = shalt.err (!%p1136_p6)
}
 0x505   : > { %s1140_s18 = scalar_lea.hbm %s1510_s20, 64  ;;  %s1144_s17 = scalar_lea.hbm %s1568_s7, 128 }
 0x506   : > { %p1141_p7 = scmp.ne.s32.totalorder %s1510_s20, %s1140_s18  ;;  %p1145_p11 = scmp.lt.u32.totalorder %s1510_s20, %s1568_s7 }
 0x507   : > { %p1146_p12 = scmp.lt.u32.totalorder %s1144_s17, %s1140_s18  ;;  %p1148_p0 = scmp.lt.u32.totalorder %s1140_s18, %s1510_s20 }
 0x508   : > { %p1142_p9 = pnand %p1141_p7, %p1303_p4 }
 0x509   : > { %p1147_p13 = por %p1146_p12, %p1145_p11 }
 0x50a   : > { %p1143_p10 = pneg %p1142_p9 }
 0x50b   : > { %p1149_p1 = por %p1148_p0, %p1147_p13 }
 0x50d   : > { %p1150_p2 = pnand %p1149_p1, %p1143_p10 }
 0x50f   : > { %1153 = shalt.err (!%p1150_p2)
}
 0x510   : > { %1034 = dma.vmem_to_hbm [thread:$0]  (%p1303_p4), %s1512_s16, 64, %s1510_s20, %s862_s15  }
 0x511 PF: > { %p1040_p3 = scmp.ge.s32.totalorder %s1208_s29, 2  ;;  %s888_s23 = sand.u32 1, %s1188_s24  }
 0x512   : > { %s889_s21 = scalar_lea.sflag [#allocation5], %s888_s23 }
 0x513   : > { %p1037_p5 = pnand %p1040_p3, %p1310_p8 }
 0x515   : > { %1183 = dma.done.wait (!%p1037_p5), %s889_s21, 64  }
 0x516   : > { %1185 = vsyncadd (!%p1037_p5), %s889_s21, 4294967232  ;;  %s20_s29 = sadd.s32 1, %s1208_s29   ;;  %s1575_s24 = smov %s1192_s25 }
 0x517   : > { %p17_p6 = scmp.ge.s32.totalorder %s20_s29, 4   ;;  %s1576_s25 = smov %s1196_s26 }
 0x518   : > { %s1577_s26 = smov %s1316_s14  ;;  %s1578_s27 = smov %s1204_s28 }
 0x519   : > { %s1579_s28 = smov %s1581_s9  ;;  %19 = sbr.rel (!%p17_p6) target bundleno = 4 (0x4), region = 105 }
 0x520   :  { %894 = vsyncpa [#allocation5], 1 }
 0x521   :  { %896 = vsyncpa [#allocation5 + $0x1], 1 }

</bundles_post_ra>
